<compile_context>
chip_gen: v6e
topology: v6e:2x2x1
jax: 0.10.0
libtpu: 0.0.40
codegen_flags: <defaults>
</compile_context>

<pallas_src>
import jax
import jax.numpy as jnp
from jax.experimental import pallas as pl
from jax.experimental.pallas import tpu as pltpu


def _round_up(x, m):
    return ((x + m - 1) // m) * m


def _mog_decoder_kernel(r_ref, w_ref, out_ref):
    # One fused MXU matmul with fp32 accumulation; single lane-dense store.
    out_ref[...] = jnp.dot(
        r_ref[...], w_ref[...], preferred_element_type=jnp.float32
    ).astype(out_ref.dtype)


def mog_decoder_forward(r, mus, log_sigmas, *, tb=512):
    """Pallas implementation of MoGDecoder.forward.

    r          : (B, N) float32
    mus        : (N, D) float32
    log_sigmas : (N, 1) float32
    returns (mu_dec, log_sigma_dec) = (r @ mus, r @ log_sigmas)

    Tiling: grid over B with block (tb_eff, N); fused weights (N, Dp) stay
    resident.  Per-step VMEM ~ 2*(tb_eff*N + tb_eff*Dp)*4 + N*Dp*4 bytes
    (double-buffered r/out tiles + resident W) — with tb=512 this stays far
    under the 16/32 MiB default scoped VMEM on v5e/v6e/v7x for moderate N.
    """
    B, N = r.shape
    N2, D = mus.shape
    assert N == N2
    assert log_sigmas.shape == (N, 1)

    # Fuse the two weight matrices into one lane-dense (padded to x128) slab.
    w = jnp.concatenate(
        [mus.astype(jnp.float32), log_sigmas.astype(jnp.float32)], axis=1
    )  # (N, D + 1)
    Dp = _round_up(D + 1, 128)
    w = jnp.pad(w, ((0, 0), (0, Dp - (D + 1))))

    # Tile B; pad with zero rows so the grid divides evenly.  Padded rows'
    # outputs are never read (sliced away below).
    tb_eff = min(tb, _round_up(B, 8))  # multiple of 8 (sublane constraint)
    Bp = _round_up(B, tb_eff)
    r_p = jnp.pad(r.astype(jnp.float32), ((0, Bp - B), (0, 0)))

    out = pl.pallas_call(
        _mog_decoder_kernel,
        out_shape=jax.ShapeDtypeStruct((Bp, Dp), jnp.float32),
        grid=(Bp // tb_eff,),
        in_specs=[
            pl.BlockSpec((tb_eff, N), lambda i: (i, 0)),  # r tile (streamed)
            pl.BlockSpec((N, Dp), lambda i: (0, 0)),      # fused W (resident)
        ],
        out_specs=pl.BlockSpec((tb_eff, Dp), lambda i: (i, 0)),
        compiler_params=pltpu.CompilerParams(
            dimension_semantics=("parallel",),
        ),
    )(r_p, w)

    mu_dec = out[:B, :D]
    log_sigma_dec = out[:B, D:D + 1]
    return mu_dec, log_sigma_dec


def init_mog_params(key, N, x_min, x_max, D):
    """Deterministic stand-in for initialize_MOG_params.

    The original uses sklearn KMeans cluster centers for `mus`; here we draw
    deterministic pseudo-random centers instead (synthetic kernel — no
    checkpoint / sklearn dependency).
    """
    # TODO(synk): sklearn KMeans-based center init has no Pallas/JAX equivalent;
    # centers are replaced with deterministic random values of the same shape.
    k_mu, _ = jax.random.split(key)
    mus = jax.random.normal(k_mu, (N, D), dtype=jnp.float32)
    log_sigmas = jnp.log(jnp.ones((N,), jnp.float32) * (x_max - x_min) / N)[:, None]
    qs = jnp.ones((N,), jnp.float32)[:, None]  # unused in forward, kept for parity
    return qs, mus, log_sigmas


if __name__ == "__main__":
    key = jax.random.PRNGKey(0)
    k_params, k_r = jax.random.split(key)

    B = 8     # batch of responsibility vectors
    N = 16    # number of mixture components
    D = 2     # data dimensionality (kmeans center dim)
    x_min, x_max = -3.0, 3.0

    qs, mus, log_sigmas = init_mog_params(k_params, N, x_min, x_max, D)

    # r: soft assignments over the N components (rows sum to 1, like softmax).
    r_logits = jax.random.normal(k_r, (B, N), dtype=jnp.float32)
    r = jax.nn.softmax(r_logits, axis=-1)

    mu_dec, log_sigma_dec = mog_decoder_forward(r, mus, log_sigmas)
    jax.block_until_ready((mu_dec, log_sigma_dec))

    # Reference check against plain JAX matmuls (same semantics as torch `@`).
    mu_ref = r @ mus
    ls_ref = r @ log_sigmas
    assert mu_dec.shape == (B, D) and log_sigma_dec.shape == (B, 1)
    assert jnp.allclose(mu_dec, mu_ref, atol=1e-5, rtol=1e-5)
    assert jnp.allclose(log_sigma_dec, ls_ref, atol=1e-5, rtol=1e-5)

    print("KERNEL_OK")
</pallas_src>

<mosaic_0001>
module attributes {stable_mosaic.version = 11 : i64} {
  func.func @_mog_decoder_kernel(%arg0: i32, %arg1: memref<8x16xf32, #tpu.memory_space<vmem>>, %arg2: memref<16x128xf32, #tpu.memory_space<vmem>>, %arg3: memref<8x128xf32, #tpu.memory_space<vmem>>) attributes {dimension_semantics = [#tpu.dimension_semantics<parallel>], iteration_bounds = array<i64: 1>, scalar_prefetch = 0 : i64, scratch_operands = 0 : i64, tpu.core_type = #tpu.core_type<tc>, window_params = [{transform_indices = @transform_0, window_bounds = array<i64: 8, 16>}, {pipeline_mode = #tpu.pipeline_mode<synchronous>, transform_indices = @transform_1, window_bounds = array<i64: 16, 128>}, {transform_indices = @transform_2, window_bounds = array<i64: 8, 128>}]} {
    %c0 = arith.constant 0 : index
    %c0_0 = arith.constant 0 : index
    %0 = vector.load %arg1[%c0, %c0_0] : memref<8x16xf32, #tpu.memory_space<vmem>>, vector<8x16xf32>
    %c0_1 = arith.constant 0 : index
    %c0_2 = arith.constant 0 : index
    %1 = vector.load %arg2[%c0_1, %c0_2] : memref<16x128xf32, #tpu.memory_space<vmem>>, vector<16x128xf32>
    %cst = arith.constant dense<0.000000e+00> : vector<8x128xf32>
    %2 = tpu.matmul %0, %1, %cst {dimension_numbers = #tpu.dot_dimension_numbers<[1], [0], [0], [1], [0, 0, 1, 1], [], []>} : vector<8x16xf32>, vector<16x128xf32>, vector<8x128xf32> -> vector<8x128xf32>
    %c0_3 = arith.constant 0 : index
    %c0_4 = arith.constant 0 : index
    %3 = vector.load %arg3[%c0_3, %c0_4] : memref<8x128xf32, #tpu.memory_space<vmem>>, vector<8x128xf32>
    tpu.vector_store %arg3[%c0_3, %c0_4], %2 {strides = array<i32>} : memref<8x128xf32, #tpu.memory_space<vmem>>, vector<8x128xf32>,
    return
  }
  func.func @transform_0(%arg0: i32) -> (i32, i32) {
    %c0_i32 = arith.constant 0 : i32
    %c0_i32_0 = arith.constant 0 : i32
    return %arg0, %c0_i32 : i32, i32
  }
  func.func @transform_1(%arg0: i32) -> (i32, i32) {
    %c0_i32 = arith.constant 0 : i32
    %c0_i32_0 = arith.constant 0 : i32
    %c0_i32_1 = arith.constant 0 : i32
    return %c0_i32, %c0_i32_0 : i32, i32
  }
  func.func @transform_2(%arg0: i32) -> (i32, i32) {
    %c0_i32 = arith.constant 0 : i32
    %c0_i32_0 = arith.constant 0 : i32
    return %arg0, %c0_i32 : i32, i32
  }
}

</mosaic_0001>

<bundles_post_ra>
// kernel: tpu_custom_call.1
= control target key start
LH: loop header
LB: loop body
LE: loop exit
PB: predicated region body
PF: predicated region fallthrough
CT: control target
= control target key end

     0   :  { %7 = vsyncpa [#allocation3], 0  ;;  %s247_s0 = inlined_call_operand.hbm [shape: f32[8,16], index: 0, kind: input, shape index: {}]   ;;  %s248_s1 = inlined_call_operand.hbm [shape: f32[16,128], index: 1, kind: input, shape index: {}]   ;;  %s249_s2 = inlined_call_operand.hbm [shape: f32[8,128], index: 2, kind: output, shape index: {}]  }
   0x1   :  { %8 = vsyncpa [#allocation6], 0 }
   0x2   :  { %9 = vsyncpa [#allocation4], 0  ;;  %s216_s9 = smov [#allocation2]   ;;  %s217_s11 = smov [#allocation5]  }
   0x3   :  { %s16_s10 = sshll.u32 %s216_s9, 4  ;;  %s25_s12 = sshll.u32 %s217_s11, 4  ;;  %s17_s10 = int_to_ptr.vmem [resolvable:$true] %s16_s10  ;;  %s26_s12 = int_to_ptr.vmem [resolvable:$true] %s25_s12 }
   0x4   :  { %s158_s13 = scalar_lea.vmem %s17_s10, 128  ;;  %p163_p1 = scmp.lt.s32.totalorder %s17_s10, %s17_s10 }
   0x5   :  { %p159_p0 = scmp.ne.s32.totalorder %s17_s10, %s158_s13  ;;  %p164_p2 = scmp.lt.s32.totalorder %s158_s13, %s158_s13 }
   0x7   :  { %p165_p3 = por %p164_p2, %p163_p1 }
   0x9   :  { %p166_p4 = pnand %p165_p3, %p159_p0 }
   0xb   :  { %169 = shalt.err (!%p166_p4)
}
   0xc   :  { %19 = dma.hbm_to_vmem [thread:$0]  %s247_s0, 128, %s17_s10, [#allocation3]  }
   0xd   :  { %s178_s16 = scalar_lea.vmem %s26_s12, 256  ;;  %p183_p6 = scmp.lt.s32.totalorder %s26_s12, %s26_s12 }
   0xe   :  { %p179_p5 = scmp.ne.s32.totalorder %s26_s12, %s178_s16  ;;  %p184_p7 = scmp.lt.s32.totalorder %s178_s16, %s178_s16 }
  0x10   :  { %p185_p8 = por %p184_p7, %p183_p6 }
  0x12   :  { %p186_p9 = pnand %p185_p8, %p179_p5 }
  0x14   :  { %189 = shalt.err (!%p186_p9)
}
  0x15   :  { %s218_s17 = smov 128   ;;  %s219_s18 = smov 8  }
  0x16   :  { %31 = dma.hbm_to_vmem [thread:$0]  %s248_s1, 256, %s26_s12, [#allocation6], %s218_s17, %s218_s17, %s219_s18  }
  0x17   :  { %210 = dma.done.wait [#allocation3], 128  }
  0x18   :  { %211 = vsyncadd [#allocation3], 4294967168 }
  0x19   :  { %212 = dma.done.wait [#allocation6], 256  }
  0x1a   :  { %213 = vsyncadd [#allocation6], 4294967040  ;;  %v220_v0 = vmov 0.0   ;;  %vm221_vm0 = vmmov 0   ;;  %v40_v1 = vld [vmem:[#allocation5 + $0x8] sm:$0xff]  ;;  %v39_v2 = vld [vmem:[#allocation5] sm:$0xff] }
  0x1b   :  { %136 = vmatprep.subr.mxu0 %v220_v0  ;;  %140 = vmatprep.mubr.msk.f32.mxu0 %vm221_vm0, %v220_v0  ;;  %v38_v3 = vld [vmem:[#allocation2] sm:$0xff]  ;;  %vm41_vm1 = vcmask 130048   ;;  %s222_s0 = smov [#allocation7]  }
  0x1c   :  { %137 = vmatpush3.msra.mxu0 %v40_v1  ;;  %s122_s21 = sshll.u32 %s222_s0, 4  ;;  %s123_s21 = int_to_ptr.vmem [resolvable:$true] %s122_s21 }
  0x1d   :  { %138 = vmatprep.subr.mxu0 %v220_v0  ;;  %s190_s1 = scalar_lea.vmem %s123_s21, 128  ;;  %p195_p11 = scmp.lt.s32.totalorder %s123_s21, %s123_s21 }
  0x1e   :  { %139 = vmatpush3.msra.mxu0 %v39_v2  ;;  %p191_p10 = scmp.ne.s32.totalorder %s123_s21, %s190_s1  ;;  %p196_p12 = scmp.lt.s32.totalorder %s190_s1, %s190_s1 }
  0x1f   :  { %141 = vmatmul.mubr.msk.f32.vlgmr.msra.gmra.mxu0 %vm41_vm1, %v38_v3 }
  0x20   :  { %p197_p13 = por %p196_p12, %p195_p11 }
  0x22   :  { %p198_p0 = pnand %p197_p13, %p191_p10 }
  0xdf   :  { %v111_v4 = vpop.f32.mrf.mxu0 }
  0xe0   :  { %115 = vst [vmem:[#allocation7] sm:$0xff] %v111_v4 }
  0xe1   :  { %v142_v5 = vpop.f32.mrf.mxu0 }
  0xe2   :  { %201 = shalt.err (!%p198_p0)
}
  0xe3   :  { %125 = dma.vmem_to_hbm [thread:$0]  %s123_s21, 128, %s249_s2, [#allocation4]  }
  0xe4   :  { %214 = dma.done.wait [#allocation4], 128  }
  0xe5   :  { %215 = vsyncadd [#allocation4], 4294967168 }
  0xe6   :  { %129 = vsyncpa [#allocation3], 1 }
  0xe7   :  { %130 = vsyncpa [#allocation6], 1 }
  0xe8   :  { %131 = vsyncpa [#allocation4], 1 }

</bundles_post_ra>
